<compile_context>
chip_gen: v6e
topology: v6e:2x2x1
jax: 0.10.0
libtpu: 0.0.40
codegen_flags: <defaults>
</compile_context>

<pallas_src>
import jax
import jax.numpy as jnp
from jax.experimental import pallas as pl
from jax.experimental.pallas import tpu as pltpu


_TARGET_BLOCK_BYTES = 2 * 1024 * 1024  # ~2 MiB per block per buffer


def _copy_trim_kernel(x_ref, o_ref):
    # Pure copy of the valid time window.  In the tiled (T_out >= 128) path
    # input/output blocks have identical shapes and the slice is a no-op; in
    # the small single-time-block path it drops the trailing column(s).
    o_ref[...] = x_ref[:, : o_ref.shape[-1]]


def _pick_tiles(rows: int, t_out: int, itemsize: int):
    """Returns (r_tile, t_tile_in, t_tile_out, tiny_time)."""
    if t_out >= 128:
        # Lane-dense, 128-aligned time tiles; only the final ragged time
        # block uses masked stores.
        t_tile = min((t_out // 128) * 128, 1024)
        t_tile_in, t_tile_out = t_tile, t_tile
        lane = t_tile
    else:
        # Tiny time axis: one time block, rely on the full-dim exception.
        t_tile_in, t_tile_out = None, None
        lane = max(t_out, 1)

    # Row tile: sublane-aligned, sized so one block is ~_TARGET_BLOCK_BYTES.
    if rows <= 8:
        r_tile = rows  # full-dim exception
    else:
        budget_rows = max(8, _TARGET_BLOCK_BYTES // max(1, lane * itemsize))
        r_tile = min((rows // 8) * 8, (budget_rows // 8) * 8, 2048)
        r_tile = max(8, r_tile)
    return r_tile, t_tile_in, t_tile_out


def wav2vec2_same_pad(hidden_states: jax.Array, num_conv_pos_embeddings: int) -> jax.Array:
    """Pallas implementation of Wav2Vec2SamePadLayer.forward.

    hidden_states: (B, C, T)
    Returns (B, C, T - 1) if num_conv_pos_embeddings is even, else (B, C, T).
    """
    num_pad_remove = 1 if num_conv_pos_embeddings % 2 == 0 else 0
    if num_pad_remove == 0:
        # Pass-through: skip the kernel entirely (free).
        return hidden_states

    B, C, T = hidden_states.shape
    T_out = T - num_pad_remove
    if T_out <= 0:
        # Degenerate: nothing left along time — empty slice, no kernel.
        return hidden_states[:, :, :0]

    R = B * C
    x2 = hidden_states.reshape(R, T)
    itemsize = jnp.dtype(hidden_states.dtype).itemsize

    r_tile, t_tile_in, t_tile_out = _pick_tiles(R, T_out, itemsize)
    if t_tile_in is None:
        t_tile_in, t_tile_out = T, T_out

    grid = (pl.cdiv(R, r_tile), pl.cdiv(T_out, t_tile_out))

    out2 = pl.pallas_call(
        _copy_trim_kernel,
        out_shape=jax.ShapeDtypeStruct((R, T_out), hidden_states.dtype),
        grid=grid,
        in_specs=[pl.BlockSpec((r_tile, t_tile_in), lambda r, t: (r, t))],
        out_specs=pl.BlockSpec((r_tile, t_tile_out), lambda r, t: (r, t)),
        compiler_params=pltpu.CompilerParams(
            dimension_semantics=("parallel", "parallel")),
        cost_estimate=pl.CostEstimate(
            flops=0,
            transcendentals=0,
            bytes_accessed=2 * R * T_out * itemsize),
    )(x2)
    return out2.reshape(B, C, T_out)


if __name__ == "__main__":
    key = jax.random.PRNGKey(0)

    # Small shape matching the module's (batch, channels, time) layout.
    B, C, T = 2, 4, 16
    x = jax.random.normal(key, (B, C, T), dtype=jnp.float32)

    # Even num_conv_pos_embeddings -> drop last time step.
    y = jax.block_until_ready(wav2vec2_same_pad(x, 128))
    assert y.shape == (B, C, T - 1), y.shape
    assert jnp.array_equal(y, x[:, :, :-1]), "mismatch vs reference slice"

    # Odd num_conv_pos_embeddings -> pure pass-through (no kernel launch).
    y2 = jax.block_until_ready(wav2vec2_same_pad(x, 129))
    assert y2.shape == (B, C, T)
    assert jnp.array_equal(y2, x)

    # Larger shape exercising the tiled, 128-aligned path with a ragged edge.
    B2, C2, T2 = 2, 16, 257
    xb = jax.random.normal(jax.random.PRNGKey(0), (B2, C2, T2), dtype=jnp.float32)
    y3 = jax.block_until_ready(wav2vec2_same_pad(xb, 128))
    assert y3.shape == (B2, C2, T2 - 1), y3.shape
    assert jnp.array_equal(y3, xb[:, :, :-1]), "mismatch vs reference slice (tiled path)"

    # bf16 path (different itemsize -> different row-tile budget).
    xc = jax.random.normal(jax.random.PRNGKey(0), (4, 8, 385), dtype=jnp.bfloat16)
    y4 = jax.block_until_ready(wav2vec2_same_pad(xc, 64))
    assert y4.shape == (4, 8, 384), y4.shape
    assert jnp.array_equal(y4, xc[:, :, :-1]), "mismatch vs reference slice (bf16 path)"

    print("KERNEL_OK")
</pallas_src>

<mosaic_0001>
module attributes {stable_mosaic.version = 11 : i64} {
  func.func @_copy_trim_kernel(%arg0: i32, %arg1: i32, %arg2: memref<8x16xf32, #tpu.memory_space<vmem>>, %arg3: memref<8x15xf32, #tpu.memory_space<vmem>>) attributes {dimension_semantics = [#tpu.dimension_semantics<parallel>, #tpu.dimension_semantics<parallel>], iteration_bounds = array<i64: 1, 1>, scalar_prefetch = 0 : i64, scratch_operands = 0 : i64, tpu.core_type = #tpu.core_type<tc>, window_params = [{transform_indices = @transform_0, window_bounds = array<i64: 8, 16>}, {transform_indices = @transform_1, window_bounds = array<i64: 8, 15>}]} {
    %c0 = arith.constant 0 : index
    %c0_0 = arith.constant 0 : index
    %0 = vector.load %arg2[%c0, %c0_0] : memref<8x16xf32, #tpu.memory_space<vmem>>, vector<8x15xf32>
    %c0_1 = arith.constant 0 : index
    %c0_2 = arith.constant 0 : index
    %1 = vector.load %arg3[%c0_1, %c0_2] : memref<8x15xf32, #tpu.memory_space<vmem>>, vector<8x15xf32>
    tpu.vector_store %arg3[%c0_1, %c0_2], %0 {strides = array<i32>} : memref<8x15xf32, #tpu.memory_space<vmem>>, vector<8x15xf32>,
    return
  }
  func.func @transform_0(%arg0: i32, %arg1: i32) -> (i32, i32) {
    %c0_i32 = arith.constant 0 : i32
    return %arg0, %arg1 : i32, i32
  }
  func.func @transform_1(%arg0: i32, %arg1: i32) -> (i32, i32) {
    %c0_i32 = arith.constant 0 : i32
    return %arg0, %arg1 : i32, i32
  }
}

</mosaic_0001>

<bundles_post_ra>
// kernel: tpu_custom_call.1
= control target key start
LH: loop header
LB: loop body
LE: loop exit
PB: predicated region body
PF: predicated region fallthrough
CT: control target
= control target key end

     0   :  { %6 = vsyncpa [#allocation3], 0  ;;  %s103_s0 = inlined_call_operand.hbm [shape: f32[8,16], index: 0, kind: input, shape index: {}]   ;;  %s104_s1 = inlined_call_operand.hbm [shape: f32[8,15], index: 1, kind: output, shape index: {}]  }
   0x1   :  { %7 = vsyncpa [#allocation4], 0  ;;  %s85_s6 = smov [#allocation2]  }
   0x2   :  { %s14_s7 = sshll.u32 %s85_s6, 4  ;;  %s15_s7 = int_to_ptr.vmem [resolvable:$true] %s14_s7 }
   0x3   :  { %s49_s8 = scalar_lea.vmem %s15_s7, 128  ;;  %p54_p1 = scmp.lt.s32.totalorder %s15_s7, %s15_s7 }
   0x4   :  { %p50_p0 = scmp.ne.s32.totalorder %s15_s7, %s49_s8  ;;  %p55_p2 = scmp.lt.s32.totalorder %s49_s8, %s49_s8 }
   0x6   :  { %p56_p3 = por %p55_p2, %p54_p1 }
   0x8   :  { %p57_p4 = pnand %p56_p3, %p50_p0 }
   0xa   :  { %60 = shalt.err (!%p57_p4)
}
   0xb   :  { %17 = dma.hbm_to_vmem [thread:$0]  %s103_s0, 128, %s15_s7, [#allocation3]  }
   0xc   :  { %81 = dma.done.wait [#allocation3], 128  }
   0xd   :  { %82 = vsyncadd [#allocation3], 4294967168  ;;  %s86_s11 = smov [#allocation5]   ;;  %vm22_vm0 = vcmask 121856   ;;  %v21_v0 = vld [vmem:[#allocation2] sm:$0xff] }
   0xe   :  { %s30_s12 = sshll.u32 %s86_s11, 4  ;;  %23 = vst.msk [vmem:[#allocation5] sm:$0xff] %vm22_vm0, %v21_v0  ;;  %s31_s12 = int_to_ptr.vmem [resolvable:$true] %s30_s12 }
   0xf   :  { %s61_s13 = scalar_lea.vmem %s31_s12, 128  ;;  %p66_p6 = scmp.lt.s32.totalorder %s31_s12, %s31_s12 }
  0x10   :  { %p62_p5 = scmp.ne.s32.totalorder %s31_s12, %s61_s13  ;;  %p67_p7 = scmp.lt.s32.totalorder %s61_s13, %s61_s13 }
  0x12   :  { %p68_p8 = por %p67_p7, %p66_p6 }
  0x14   :  { %p69_p9 = pnand %p68_p8, %p62_p5 }
  0x16   :  { %72 = shalt.err (!%p69_p9)
}
  0x17   :  { %33 = dma.vmem_to_hbm [thread:$0]  %s31_s12, 128, %s104_s1, [#allocation4]  }
  0x18   :  { %83 = dma.done.wait [#allocation4], 128  }
  0x19   :  { %84 = vsyncadd [#allocation4], 4294967168 }
  0x1a   :  { %37 = vsyncpa [#allocation3], 1 }
  0x1b   :  { %38 = vsyncpa [#allocation4], 1 }

</bundles_post_ra>
